<compile_context>
chip_gen: v7x
topology: tpu7x:2x2x1
jax: 0.10.0
libtpu: 0.0.40
codegen_flags: <defaults>
</compile_context>

<pallas_src>
import functools

import jax
import jax.numpy as jnp
from jax.experimental import pallas as pl
from jax.experimental.pallas import tpu as pltpu

EPS = 1e-12


# ----------------------------------------------------------------------------
# Fused Pallas kernel: all layers + hook normalization in one call
# ----------------------------------------------------------------------------
def _fused_stack_kernel(x_ref, w_ref, b_ref, out_ref, act_ref, h_ref, *, layer_num):
    """One grid step = (row tile i, layer l).

    x_ref:   (tm, D)  f32   initial embeddings (consumed only at l == 0)
    w_ref:   (D, D)   bf16  layer-l weight   (leading L dim squeezed by BlockSpec)
    b_ref:   (1, D)   f32   layer-l bias     (leading L dim squeezed by BlockSpec)
    out_ref: (tm, D)  f32   final model output        (written at last layer)
    act_ref: (tm, D)  f32   normalized hook output    (written at l == layer_num)
    h_ref:   (tm, D)  f32   VMEM scratch carrying h across the layer axis
    """
    l = pl.program_id(1)

    @pl.when(l == 0)
    def _():
        h_ref[...] = x_ref[...].astype(jnp.float32)

    # GELU(h @ W + b): bf16 MXU operands, f32 accumulation and f32 epilogue math.
    h = h_ref[...]
    y = jnp.dot(h.astype(jnp.bfloat16), w_ref[...],
                preferred_element_type=jnp.float32)
    y = jax.nn.gelu(y + b_ref[...])
    h_ref[...] = y

    # "forward hook": L2-normalize the layer output along the hidden dim.
    # Matches torch: act / (||act||_2 + eps).  Row-sum -> XLU, reciprocal -> EUP,
    # both in otherwise-idle slots next to the MXU-bound matmul.
    @pl.when(l == layer_num)
    def _():
        norm = jnp.sqrt(jnp.sum(y * y, axis=-1, keepdims=True))
        act_ref[...] = (y * (1.0 / (norm + EPS))).astype(act_ref.dtype)

    @pl.when(l == pl.num_programs(1) - 1)
    def _():
        out_ref[...] = y.astype(out_ref.dtype)


# ----------------------------------------------------------------------------
# Wrapper
# ----------------------------------------------------------------------------
def activation_collector_forward(embeds, w_stack, b_stack, layer_num, *, row_tile=256):
    """
    embeds:  (B, S, D) f32  -- stand-in for the embedding of input_ids.
    w_stack: (L, D, D) bf16 -- stacked layer weights (MXU operands).
    b_stack: (L, 1, D) f32  -- stacked layer biases.
    Returns (outputs, normalized_activations), both (B, S, D) f32.
    """
    B, S, D = embeds.shape
    L = w_stack.shape[0]
    M = B * S
    x = embeds.reshape(M, D)

    tm = M if M <= row_tile else row_tile
    assert M % tm == 0 and tm % 8 == 0 and D % 128 == 0, (M, tm, D)
    grid = (M // tm, L)

    kernel = functools.partial(_fused_stack_kernel, layer_num=layer_num)

    out, acts = pl.pallas_call(
        kernel,
        out_shape=(
            jax.ShapeDtypeStruct((M, D), jnp.float32),
            jax.ShapeDtypeStruct((M, D), jnp.float32),
        ),
        grid_spec=pltpu.PrefetchScalarGridSpec(
            num_scalar_prefetch=0,
            grid=grid,
            in_specs=[
                # x: constant block index across l -> DMA'd once per row tile.
                pl.BlockSpec((tm, D), lambda i, l: (i, 0)),
                # weight / bias: stream per layer, leading L dim squeezed.
                pl.BlockSpec((None, D, D), lambda i, l: (l, 0, 0)),
                pl.BlockSpec((None, 1, D), lambda i, l: (l, 0, 0)),
            ],
            out_specs=[
                # same block index across l -> stays VMEM-resident until i changes.
                pl.BlockSpec((tm, D), lambda i, l: (i, 0)),
                pl.BlockSpec((tm, D), lambda i, l: (i, 0)),
            ],
            scratch_shapes=[pltpu.VMEM((tm, D), jnp.float32)],
        ),
        compiler_params=pltpu.CompilerParams(
            dimension_semantics=("parallel", "arbitrary"),
        ),
        cost_estimate=pl.CostEstimate(
            flops=2 * M * D * D * L,
            transcendentals=M * D * L,                       # gelu tanh per elem/layer
            bytes_accessed=(M * D * 4                        # x in
                            + L * D * D * 2 + L * D * 4      # bf16 weights + f32 bias
                            + 2 * M * D * 4),                # two f32 outputs
        ),
    )(x, w_stack, b_stack)

    return out.reshape(B, S, D), acts.reshape(B, S, D)


# ----------------------------------------------------------------------------
# Pure-JAX reference (same arithmetic: bf16 MXU operands, f32 accumulation)
# ----------------------------------------------------------------------------
def reference_forward(embeds, w_stack, b_stack, layer_num):
    B, S, D = embeds.shape
    h = embeds.reshape(B * S, D)
    acts = None
    for l in range(w_stack.shape[0]):
        y = jnp.dot(h.astype(jnp.bfloat16), w_stack[l],
                    preferred_element_type=jnp.float32)
        h = jax.nn.gelu(y + b_stack[l])
        if l == layer_num:
            norm = jnp.sqrt(jnp.sum(h * h, axis=-1, keepdims=True))
            acts = h / (norm + EPS)
    return h.reshape(B, S, D), acts.reshape(B, S, D)


# ----------------------------------------------------------------------------
# Main
# ----------------------------------------------------------------------------
if __name__ == "__main__":
    B, S, D = 2, 8, 128          # batch, seq, hidden
    NUM_LAYERS = 4
    LAYER_NUM = 2

    key = jax.random.PRNGKey(0)
    k_embed, k_params = jax.random.split(key)

    # deterministic "input_ids -> embeddings" stand-in
    embeds = jax.random.normal(k_embed, (B, S, D), jnp.float32)

    pkeys = jax.random.split(k_params, 2 * NUM_LAYERS)
    w_stack = jnp.stack([
        jax.random.normal(pkeys[2 * i], (D, D), jnp.float32) * (D ** -0.5)
        for i in range(NUM_LAYERS)
    ]).astype(jnp.bfloat16)                                   # (L, D, D) bf16
    b_stack = jnp.stack([
        jax.random.normal(pkeys[2 * i + 1], (1, D), jnp.float32) * 0.01
        for i in range(NUM_LAYERS)
    ])                                                        # (L, 1, D) f32

    fwd = jax.jit(functools.partial(activation_collector_forward,
                                    layer_num=LAYER_NUM))
    outputs, acts = fwd(embeds, w_stack, b_stack)
    outputs, acts = jax.block_until_ready((outputs, acts))

    # sanity 1: normalized rows should have unit L2 norm (up to eps)
    norms = jnp.linalg.norm(acts.reshape(-1, D), axis=-1)
    assert jnp.allclose(norms, 1.0, atol=1e-4), norms

    # sanity 2: fused kernel matches the pure-JAX reference
    ref_out, ref_acts = reference_forward(embeds, w_stack, b_stack, LAYER_NUM)
    assert jnp.allclose(outputs, ref_out, atol=5e-2, rtol=5e-2)
    assert jnp.allclose(acts, ref_acts, atol=1e-2, rtol=1e-2)

    print("KERNEL_OK")
</pallas_src>

<mosaic_0001>
module attributes {stable_mosaic.version = 11 : i64} {
  func.func @_fused_stack_kernel(%arg0: i32, %arg1: i32, %arg2: memref<16x128xf32, #tpu.memory_space<vmem>>, %arg3: memref<1x128x128xbf16, #tpu.memory_space<vmem>>, %arg4: memref<1x1x128xf32, #tpu.memory_space<vmem>>, %arg5: memref<16x128xf32, #tpu.memory_space<vmem>>, %arg6: memref<16x128xf32, #tpu.memory_space<vmem>>, %arg7: memref<16x128xf32, #tpu.memory_space<vmem>>) attributes {dimension_semantics = [#tpu.dimension_semantics<parallel>, #tpu.dimension_semantics<arbitrary>], iteration_bounds = array<i64: 1, 4>, scalar_prefetch = 0 : i64, scratch_operands = 1 : i64, tpu.core_type = #tpu.core_type<tc>, window_params = [{transform_indices = @transform_0, window_bounds = array<i64: 16, 128>}, {transform_indices = @transform_1, window_bounds = array<i64: 1, 128, 128>}, {transform_indices = @transform_2, window_bounds = array<i64: 1, 1, 128>}, {transform_indices = @transform_3, window_bounds = array<i64: 16, 128>}, {transform_indices = @transform_4, window_bounds = array<i64: 16, 128>}]} {
    %c0_i32 = arith.constant 0 : i32
    %0 = arith.cmpi eq, %arg1, %c0_i32 : i32
    %1 = arith.extui %0 : i1 to i32
    %c0_i32_0 = arith.constant 0 : i32
    %2 = arith.cmpi ne, %1, %c0_i32_0 : i32
    scf.if %2 {
      %c0_16 = arith.constant 0 : index
      %c0_17 = arith.constant 0 : index
      %32 = vector.load %arg2[%c0_16, %c0_17] : memref<16x128xf32, #tpu.memory_space<vmem>>, vector<16x128xf32>
      %c0_18 = arith.constant 0 : index
      %c0_19 = arith.constant 0 : index
      %33 = vector.load %arg7[%c0_18, %c0_19] : memref<16x128xf32, #tpu.memory_space<vmem>>, vector<16x128xf32>
      tpu.vector_store %arg7[%c0_18, %c0_19], %32 {strides = array<i32>} : memref<16x128xf32, #tpu.memory_space<vmem>>, vector<16x128xf32>,
    } else {
    }
    %c0 = arith.constant 0 : index
    %c0_1 = arith.constant 0 : index
    %3 = vector.load %arg7[%c0, %c0_1] : memref<16x128xf32, #tpu.memory_space<vmem>>, vector<16x128xf32>
    %4 = arith.truncf %3 : vector<16x128xf32> to vector<16x128xbf16>
    %c0_2 = arith.constant 0 : index
    %c0_3 = arith.constant 0 : index
    %c0_4 = arith.constant 0 : index
    %5 = vector.load %arg3[%c0_2, %c0_3, %c0_4] : memref<1x128x128xbf16, #tpu.memory_space<vmem>>, vector<1x128x128xbf16>
    %6 = vector.shape_cast %5 : vector<1x128x128xbf16> to vector<128x128xbf16>
    %cst = arith.constant dense<0.000000e+00> : vector<16x128xf32>
    %7 = tpu.matmul %4, %6, %cst {dimension_numbers = #tpu.dot_dimension_numbers<[1], [0], [0], [1], [0, 0, 1, 1], [], []>} : vector<16x128xbf16>, vector<128x128xbf16>, vector<16x128xf32> -> vector<16x128xf32>
    %c0_5 = arith.constant 0 : index
    %c0_6 = arith.constant 0 : index
    %c0_7 = arith.constant 0 : index
    %8 = vector.load %arg4[%c0_5, %c0_6, %c0_7] : memref<1x1x128xf32, #tpu.memory_space<vmem>>, vector<1x1x128xf32>
    %9 = vector.shape_cast %8 : vector<1x1x128xf32> to vector<1x128xf32>
    %10 = vector.broadcast %9 : vector<1x128xf32> to vector<16x128xf32>
    %11 = arith.addf %7, %10 : vector<16x128xf32>
    %12 = arith.mulf %11, %11 : vector<16x128xf32>
    %13 = arith.mulf %11, %12 : vector<16x128xf32>
    %cst_8 = arith.constant 4.471500e-02 : f32
    %14 = vector.broadcast %cst_8 : f32 to vector<16x128xf32>
    %15 = arith.mulf %14, %13 : vector<16x128xf32>
    %16 = arith.addf %11, %15 : vector<16x128xf32>
    %cst_9 = arith.constant 0.797884583 : f32
    %17 = vector.broadcast %cst_9 : f32 to vector<16x128xf32>
    %18 = arith.mulf %17, %16 : vector<16x128xf32>
    %19 = math.tanh %18 : vector<16x128xf32>
    %cst_10 = arith.constant 1.000000e+00 : f32
    %20 = vector.broadcast %cst_10 : f32 to vector<16x128xf32>
    %21 = arith.addf %20, %19 : vector<16x128xf32>
    %cst_11 = arith.constant 5.000000e-01 : f32
    %22 = vector.broadcast %cst_11 : f32 to vector<16x128xf32>
    %23 = arith.mulf %22, %21 : vector<16x128xf32>
    %24 = arith.mulf %11, %23 : vector<16x128xf32>
    %c0_12 = arith.constant 0 : index
    %c0_13 = arith.constant 0 : index
    %25 = vector.load %arg7[%c0_12, %c0_13] : memref<16x128xf32, #tpu.memory_space<vmem>>, vector<16x128xf32>
    tpu.vector_store %arg7[%c0_12, %c0_13], %24 {strides = array<i32>} : memref<16x128xf32, #tpu.memory_space<vmem>>, vector<16x128xf32>,
    %c2_i32 = arith.constant 2 : i32
    %26 = arith.cmpi eq, %arg1, %c2_i32 : i32
    %27 = arith.extui %26 : i1 to i32
    %c0_i32_14 = arith.constant 0 : i32
    %28 = arith.cmpi ne, %27, %c0_i32_14 : i32
    scf.if %28 {
      %32 = arith.mulf %24, %24 : vector<16x128xf32>
      %cst_16 = arith.constant dense<0.000000e+00> : vector<16xf32>
      %33 = vector.multi_reduction <add>, %32, %cst_16 [1] : vector<16x128xf32> to vector<16xf32>
      %34 = vector.shape_cast %33 : vector<16xf32> to vector<16x1xf32>
      %35 = math.sqrt %34 : vector<16x1xf32>
      %cst_17 = arith.constant 9.99999996E-13 : f32
      %36 = vector.broadcast %cst_17 : f32 to vector<16x1xf32>
      %37 = arith.addf %35, %36 : vector<16x1xf32>
      %cst_18 = arith.constant 1.000000e+00 : f32
      %38 = vector.broadcast %cst_18 : f32 to vector<16x1xf32>
      %39 = arith.divf %38, %37 : vector<16x1xf32>
      %40 = vector.broadcast %39 : vector<16x1xf32> to vector<16x128xf32>
      %41 = arith.mulf %24, %40 : vector<16x128xf32>
      %c0_19 = arith.constant 0 : index
      %c0_20 = arith.constant 0 : index
      %42 = vector.load %arg6[%c0_19, %c0_20] : memref<16x128xf32, #tpu.memory_space<vmem>>, vector<16x128xf32>
      tpu.vector_store %arg6[%c0_19, %c0_20], %41 {strides = array<i32>} : memref<16x128xf32, #tpu.memory_space<vmem>>, vector<16x128xf32>,
    } else {
    }
    %c3_i32 = arith.constant 3 : i32
    %29 = arith.cmpi eq, %arg1, %c3_i32 : i32
    %30 = arith.extui %29 : i1 to i32
    %c0_i32_15 = arith.constant 0 : i32
    %31 = arith.cmpi ne, %30, %c0_i32_15 : i32
    scf.if %31 {
      %c0_16 = arith.constant 0 : index
      %c0_17 = arith.constant 0 : index
      %32 = vector.load %arg5[%c0_16, %c0_17] : memref<16x128xf32, #tpu.memory_space<vmem>>, vector<16x128xf32>
      tpu.vector_store %arg5[%c0_16, %c0_17], %24 {strides = array<i32>} : memref<16x128xf32, #tpu.memory_space<vmem>>, vector<16x128xf32>,
    } else {
    }
    return
  }
  func.func @transform_0(%arg0: i32, %arg1: i32) -> (i32, i32) {
    %c0_i32 = arith.constant 0 : i32
    %c0_i32_0 = arith.constant 0 : i32
    return %arg0, %c0_i32 : i32, i32
  }
  func.func @transform_1(%arg0: i32, %arg1: i32) -> (i32, i32, i32) {
    %c0_i32 = arith.constant 0 : i32
    %c0_i32_0 = arith.constant 0 : i32
    %c0_i32_1 = arith.constant 0 : i32
    return %arg1, %c0_i32, %c0_i32_0 : i32, i32, i32
  }
  func.func @transform_2(%arg0: i32, %arg1: i32) -> (i32, i32, i32) {
    %c0_i32 = arith.constant 0 : i32
    %c0_i32_0 = arith.constant 0 : i32
    %c0_i32_1 = arith.constant 0 : i32
    return %arg1, %c0_i32, %c0_i32_0 : i32, i32, i32
  }
  func.func @transform_3(%arg0: i32, %arg1: i32) -> (i32, i32) {
    %c0_i32 = arith.constant 0 : i32
    %c0_i32_0 = arith.constant 0 : i32
    return %arg0, %c0_i32 : i32, i32
  }
  func.func @transform_4(%arg0: i32, %arg1: i32) -> (i32, i32) {
    %c0_i32 = arith.constant 0 : i32
    %c0_i32_0 = arith.constant 0 : i32
    return %arg0, %c0_i32 : i32, i32
  }
}

</mosaic_0001>

<bundles_post_ra>
// kernel: activation_collector_forward.1
= control target key start
LH: loop header
LB: loop body
LE: loop exit
PB: predicated region body
PF: predicated region fallthrough
CT: control target
= control target key end

     0   :  { %10 = vsyncpa [#allocation4], 0  ;;  %s1182_s0 = inlined_call_operand.hbm [shape: f32[16,128], index: 0, kind: input, shape index: {}]   ;;  %s1183_s1 = inlined_call_operand.hbm [shape: bf16[4,128,128], index: 1, kind: input, shape index: {}]   ;;  %s1184_s2 = inlined_call_operand.vmem [shape: f32[4,1,128], index: 2, kind: input, shape index: {}]   ;;  %s1185_s3 = inlined_call_operand.hbm [shape: f32[16,128], index: 3, kind: output, shape index: {0}]   ;;  %s1186_s4 = inlined_call_operand.hbm [shape: f32[16,128], index: 4, kind: output, shape index: {1}]  }
   0x1   :  { %11 = vsyncpa [#allocation7], 0 }
   0x2   :  { %13 = vsyncpa [#allocation7 + $0x1], 0 }
   0x3   :  { %14 = vsyncpa [#allocation5], 0 }
   0x4   :  { %15 = vsyncpa [#allocation10], 0  ;;  %s951_s15 = smov 0   ;;  %s953_s16 = smov 0  }
   0x5   :  { %s955_s17 = smov 0   ;;  %s957_s18 = smov 0  }
   0x6   :  { %s959_s19 = smov 0   ;;  %s961_s20 = smov 0  }
   0x7 LB: > { %s574_s21 = sadd.s32 4294967295, %s912_s20   ;;  %p79_p0 = scmp.ne.s32.totalorder %s896_s16, %s892_s15  ;;  %s912_s20 = sphi %s961_s20, %s21_s20   ;;  %s908_s19 = sphi %s959_s19, %s1204_s19   ;;  %s904_s18 = sphi %s957_s18, %s1203_s18   ;;  %s900_s17 = sphi %s955_s17, %s1202_s17   ;;  %s896_s16 = sphi %s953_s16, %s1201_s16   ;;  %s892_s15 = sphi %s951_s15, %s1200_s15  }
   0x8   : > { %p983_p1 = scmp.eq.s32.totalorder %s574_s21, 0  ;;  %p575_p2 = scmp.ge.s32.totalorder %s912_s20, 1 }
   0x9   : > { %p168_p3 = scmp.lt.s32.totalorder %s912_s20, 5  ;;  %s914_s25 = smov [#allocation3]  }
   0xa   : > { %s1191_s22 = scalar_select %p983_p1, 1, 0 }
   0xb   : > { %p991_p4 = por %p983_p1, %p79_p0  ;;  %p995_p5 = pnand %p575_p2, %p168_p3 }
   0xc   : > { %s183_s26 = sshll.u32 %s914_s25, 4  ;;  %s30_s28 = sadd.s32 1, %s908_s19  ;;  %s184_s26 = int_to_ptr.vmem [resolvable:$true] %s183_s26 }
   0xd   : > { %s1192_s23 = scalar_select %p991_p4, 1, 0 }
   0xe   : > { %s1193_s24 = scalar_select %p995_p5, 1, 0 }
   0xf   : > { %p646_p6 = pneg %p995_p5  ;;  %s740_s5 = scalar_lea.hbm %s1182_s0, 256 }
  0x10   : > { %p741_p8 = scmp.ne.s32.totalorder %s1182_s0, %s740_s5  ;;  %p747_p12 = scmp.lt.u32.totalorder %s740_s5, %s1182_s0 }
  0x11   : > { %p1003_p7 = pnand %p646_p6, %p983_p1 }
  0x13   : > { %p742_p9 = pneg %p1003_p7 }
  0x15   : > { %p743_p10 = pnand %p742_p9, %p741_p8 }
  0x17   : > { %p744_p11 = pneg %p743_p10 }
  0x19   : > { %p749_p13 = pnand %p747_p12, %p744_p11 }
  0x1b   : > { %752 = shalt.err (!%p749_p13)
}
  0x1c   : > { %s753_s10 = scalar_lea.vmem %s184_s26, 256  ;;  %p761_p6 = scmp.lt.s32.totalorder %s184_s26, %s184_s26 }
  0x1d   : > { %p754_p0 = scmp.ne.s32.totalorder %s184_s26, %s753_s10  ;;  %p762_p4 = scmp.lt.s32.totalorder %s753_s10, %s753_s10 }
  0x1f   : > { %p756_p2 = pnand %p754_p0, %p742_p9  ;;  %p763_p1 = por %p762_p4, %p761_p6 }
  0x21   : > { %p757_p3 = pneg %p756_p2 }
  0x23   : > { %p764_p5 = pnand %p763_p1, %p757_p3 }
  0x25   : > { %767 = shalt.err (!%p764_p5)
}
  0x26   : > { %s915_s11 = smov 128   ;;  %s916_s12 = smov 8  }
  0x27   : > { %649 = dma.hbm_to_vmem [thread:$0]  (!%p1003_p7), %s1182_s0, 256, %s184_s26, [#allocation4], %s915_s11, %s915_s11, %s916_s12  }
  0x28   : > { %p31_p4 = scmp.ge.s32.totalorder %s30_s28, 4  ;;  %s66_s15 = sadd.s32 1, %s900_s17 }
  0x29   : > { %p73_p1 = scmp.ne.s32.totalorder %s900_s17, %s896_s16  ;;  %p74_p5 = scmp.eq.s32.totalorder %s912_s20, 0 }
  0x2a   : > { %s1206_s28 = smov (%p31_p4, %s30_s28), 0  ;;  %p655_p9 = scmp.lt.s32.totalorder %s912_s20, 4 }
  0x2b   : > { %p75_p8 = por %p74_p5, %p73_p1  ;;  %s63_s25 = ssub.s32 %s908_s19, %s1206_s28 }
  0x2c   : > { %s197_s29 = sand.u32 1, %s900_s17   ;;  %p64_p10 = scmp.eq.s32.totalorder %s63_s25, 0 }
  0x2d   : > { %s578_s30 = sshll.u32 %s197_s29, 6  ;;  %s602_s5 = sshll.u32 %s908_s19, 10 }
  0x2e   : > { %s1036_s6 = scalar_select %p64_p10, %s900_s17, %s66_s15  }
  0x2f   : > { %s1041_s26 = scalar_lea.hbm %s1183_s1, %s602_s5  ;;  %s201_s8 = scalar_lea.vmem [#allocation6], %s578_s30 }
  0x30   : > { %s208_s9 = sshll.u32 %s201_s8, 4  ;;  %p1043_p7 = pnand %p655_p9, %p75_p8  ;;  %s1047_s9 = int_to_ptr.vmem [resolvable:$true] %s208_s9 }
  0x31   : > { %s1049_s11 = scalar_lea.sflag [#allocation7], %s197_s29  ;;  %s768_s12 = scalar_lea.hbm %s1041_s26, 1024 }
  0x32   : > { %p769_p11 = scmp.ne.s32.totalorder %s1041_s26, %s768_s12  ;;  %p770_p12 = pneg %p1043_p7 }
  0x33   : > { %s773_s15 = scalar_lea.hbm %s1183_s1, 4096  ;;  %p774_p2 = scmp.lt.u32.totalorder %s1041_s26, %s1183_s1 }
  0x34   : > { %p771_p13 = pnand %p770_p12, %p769_p11  ;;  %p775_p3 = scmp.lt.u32.totalorder %s773_s15, %s768_s12 }
  0x35   : > { %p777_p4 = scmp.lt.u32.totalorder %s768_s12, %s1041_s26 }
  0x36   : > { %p772_p0 = pneg %p771_p13  ;;  %p776_p6 = por %p775_p3, %p774_p2 }
  0x38   : > { %p778_p1 = por %p777_p4, %p776_p6 }
  0x3a   : > { %p779_p5 = pnand %p778_p1, %p772_p0 }
  0x3c   : > { %782 = shalt.err (!%p779_p5)
}
  0x3d   : > { %s783_s29 = scalar_lea.vmem %s1047_s9, 1024  ;;  %s917_s5 = smov [#allocation6]  }
  0x3e   : > { %p784_p8 = scmp.ne.s32.totalorder %s1047_s9, %s783_s29  ;;  %s788_s27 = sshll.u32 %s917_s5, 4  ;;  %s789_s27 = int_to_ptr.vmem [resolvable:$false] %s788_s27 }
  0x3f   : > { %s790_s7 = scalar_lea.vmem %s789_s27, 2048  ;;  %p791_p11 = scmp.lt.s32.totalorder %s1047_s9, %s789_s27 }
  0x40   : > { %p786_p9 = pnand %p784_p8, %p770_p12  ;;  %p792_p13 = scmp.lt.s32.totalorder %s790_s7, %s783_s29 }
  0x42   : > { %p787_p10 = pneg %p786_p9  ;;  %p793_p2 = por %p792_p13, %p791_p11 }
  0x44   : > { %p794_p3 = pnand %p793_p2, %p787_p10 }
  0x46   : > { %797 = shalt.err (!%p794_p3)
}
  0x47   : > { %s918_s8 = smov 64   ;;  %s919_s12 = smov 4  }
  0x48   : > { %653 = dma.hbm_to_vmem [thread:$0]  (!%p1043_p7), %s1041_s26, 1024, %s1047_s9, %s1049_s11, %s918_s8, %s918_s8, %s919_s12  }
  0x49   : > { %p1196_p12 = scmp.ne.s32.totalorder %s1193_s24, 0 }
  0x4a   : > { %p1197_p0 = scmp.ne.s32.totalorder (!%p1196_p12), %s1191_s22, 0 }
  0x4b   : > { %226 = sbr.rel (%p1196_p12) target bundleno = 610 (0x262), region = 32 }
  0x52   : > { %875 = dma.done.wait (%p1197_p0), [#allocation4], 256  }
  0x53   : > { %877 = vsyncadd (%p1197_p0), [#allocation4], 4294967040  ;;  %s232_s13 = sand.u32 1, %s896_s16   ;;  %p1198_p6 = scmp.ne.s32.totalorder %s1192_s23, 0 }
  0x54   : > { %s583_s14 = sshll.u32 %s232_s13, 6  ;;  %s233_s15 = scalar_lea.sflag [#allocation7], %s232_s13 }
  0x55   : > { %s1084_s25 = scalar_lea.vmem [#allocation6], %s583_s14 }
  0x56   : > { %879 = dma.done.wait (%p1198_p6), %s233_s15, 1024  }
  0x57   : > { %881 = vsyncadd (%p1198_p6), %s233_s15, 4294966272  ;;  %p260_p7 = scmp.lt.s32.totalorder %s904_s18, 3  ;;  %p584_p4 = scmp.ne.s32.totalorder %s904_s18, 0 }
  0x58   : > { %v270_v0 = vld [vmem:[#allocation3] sm:$0xff] (!%p584_p4)  ;;  %v271_v1 = vld [vmem:[#allocation3 + $0x8] sm:$0xff] (!%p584_p4) }
  0x59   : > { %s1092_s24 = scalar_select %p260_p7, %s904_s18, 3 }
  0x5a   : > { %269 = sbr.rel (%p584_p4) target bundleno = 97 (0x61), region = 44  ;;  %272 = vst [vmem:[#allocation2] sm:$0xff] (!%p584_p4), %v270_v0  ;;  %273 = vst [vmem:[#allocation2 + $0x8] sm:$0xff] (!%p584_p4), %v271_v1 }
  0x5b   : > { %s262_s9 = scalar_lea.vmem %s1184_s2, %s1092_s24 }
  0x61 PF: > { %v720_v2 = vld [vmem:[%s1084_s25] sm:$0xff]   ;;  %v920_v3 = vmov 0.0   ;;  %v721_v4 = vld [vmem:[%s1084_s25 + $0x8] sm:$0xff]   ;;  %vm921_vm0 = vmmov 0   ;;  %v722_v5 = vld [vmem:[%s1084_s25 + $0x10] sm:$0xff]   ;;  %p594_p1 = scmp.ne.s32.totalorder %s904_s18, 2 }
  0x62   : > { %612 = vmatprep.subr.bf16.mxu0 %v920_v3  ;;  %628 = vmatprep.mubr.msk.bf16.mxu0 %vm921_vm0, %v920_v3  ;;  %v723_v6 = vld [vmem:[%s1084_s25 + $0x18] sm:$0xff]   ;;  %v724_v7 = vld [vmem:[%s1084_s25 + $0x20] sm:$0xff]   ;;  %v725_v8 = vld [vmem:[%s1084_s25 + $0x28] sm:$0xff]  }
  0x63   : > { %613 = vmatpush3.bf16.msra.mxu0 %v720_v2  ;;  %v726_v9 = vld [vmem:[%s1084_s25 + $0x30] sm:$0xff]   ;;  %v727_v10 = vld [vmem:[%s1084_s25 + $0x38] sm:$0xff]   ;;  %v274_v11 = vld [vmem:[#allocation2] sm:$0xff] }
  0x64   : > { %614 = vmatprep.subr.bf16.mxu0 %v920_v3  ;;  %v275_v12 = vld [vmem:[#allocation2 + $0x8] sm:$0xff]  ;;  %v585_v14 = vld [vmem:[%s262_s9] ss:$0 sm:$0xff] }
  0x65   : > { %v276_v13 = vpack.c.bf16 %v275_v12, %v274_v11 }
  0x67   : > { %615 = vmatpush3.bf16.msra.mxu0 %v721_v4 }
  0x68   : > { %616 = vmatprep.subr.bf16.mxu0 %v920_v3 }
  0x6b   : > { %617 = vmatpush3.bf16.msra.mxu0 %v722_v5 }
  0x6c   : > { %618 = vmatprep.subr.bf16.mxu0 %v920_v3 }
  0x6f   : > { %619 = vmatpush3.bf16.msra.mxu0 %v723_v6 }
  0x70   : > { %620 = vmatprep.subr.bf16.mxu0 %v920_v3 }
  0x73   : > { %621 = vmatpush3.bf16.msra.mxu0 %v724_v7 }
  0x74   : > { %622 = vmatprep.subr.bf16.mxu0 %v920_v3 }
  0x77   : > { %623 = vmatpush3.bf16.msra.mxu0 %v725_v8 }
  0x78   : > { %624 = vmatprep.subr.bf16.mxu0 %v920_v3 }
  0x7b   : > { %625 = vmatpush3.bf16.msra.mxu0 %v726_v9 }
  0x7c   : > { %626 = vmatprep.subr.bf16.mxu0 %v920_v3 }
  0x7f   : > { %627 = vmatpush3.bf16.msra.mxu0 %v727_v10 }
  0x82   : > { %629 = vmatmul.mubr.bf16.vlgmr.msra.gmra.mrb[0].mxu0 %v276_v13 }
 0x155   : > { %v382_v15 = vpop.f32.mrb[0].mxu0 }
 0x156   : > { %v383_v16 = vadd.f32 %v585_v14, %v382_v15  ;;  %v630_v17 = vpop.f32.mrb[1].mxu0 }
 0x157   : > { %v385_v18 = vpop.f32.mrb[2].mxu0 }
 0x158   : > { %v389_v19 = vmul.f32 %v383_v16, %v383_v16  ;;  %v386_v20 = vadd.f32 %v585_v14, %v385_v18  ;;  %v631_v21 = vpop.f32.mrb[3].mxu0 }
 0x15a   : > { %v391_v22 = vmul.f32 %v389_v19, %v383_v16  ;;  %v390_v23 = vmul.f32 %v386_v20, %v386_v20 }
 0x15c   : > { %v393_v24 = vmul.f32 0.044715, %v391_v22  ;;  %v392_v25 = vmul.f32 %v390_v23, %v386_v20 }
 0x15e   : > { %v395_v26 = vadd.f32 %v393_v24, %v383_v16  ;;  %v394_v27 = vmul.f32 0.044715, %v392_v25 }
 0x160   : > { %v397_v28 = vmul.f32 0.7978846, %v395_v26  ;;  %v396_v29 = vadd.f32 %v394_v27, %v386_v20 }
 0x162   : > { %728 = vtanh.f32 %v397_v28  ;;  %v398_v30 = vmul.f32 0.7978846, %v396_v29 }
 0x164   : > { %730 = vtanh.f32 %v398_v30 }
 0x16c   : > { %v729_v31 = vpop.eup %728 }
 0x16d   : > { %v401_v32 = vadd.f32 1.0, %v729_v31 }
 0x16e   : > { %v731_v33 = vpop.eup %730 }
 0x16f   : > { %v403_v34 = vmul.f32 0.5, %v401_v32  ;;  %v402_v35 = vadd.f32 1.0, %v731_v33  ;;  %412 = sbr.rel (%p594_p1) target bundleno = 550 (0x226), region = 48 }
 0x171   : > { %v405_v36 = vmul.f32 %v403_v34, %v383_v16  ;;  %v404_v37 = vmul.f32 0.5, %v402_v35 }
 0x173   : > { %407 = vst [vmem:[#allocation2] sm:$0xff] %v405_v36  ;;  %v406_v38 = vmul.f32 %v404_v37, %v386_v20  ;;  %v413_v39 = vmul.f32 (!%p594_p1), %v405_v36, %v405_v36 }
 0x175   : > { %408 = vst [vmem:[#allocation2 + $0x8] sm:$0xff] %v406_v38  ;;  %415 = vadd.xlane.f32.xlu0 (!%p594_p1), %v413_v39  ;;  %v414_v40 = vmul.f32 (!%p594_p1), %v406_v38, %v406_v38 }
 0x179   : > { %417 = vadd.xlane.f32.xlu0 %v414_v40 }
 0x202   : > { %v416_v41 = vpop.xlane.xlu0 %415 }
 0x203   : > { %732 = vrsqrt.f32 %v416_v41  ;;  %vm421_vm1 = vcmp.eq.f32.partialorder %v416_v41, inf  ;;  %v424_v45 = vand.u32 2147483648, %v416_v41  ;;  %vm423_vm2 = vcmp.eq.f32.partialorder %v416_v41, 0.0 }
 0x206   : > { %v418_v42 = vpop.xlane.xlu0 %417 }
 0x207   : > { %734 = vrsqrt.f32 %v418_v42  ;;  %vm428_vm3 = vcmp.eq.f32.partialorder %v418_v42, inf  ;;  %v431_v51 = vand.u32 2147483648, %v418_v42  ;;  %vm430_vm4 = vcmp.eq.f32.partialorder %v418_v42, 0.0 }
 0x20d   : > { %v733_v43 = vpop.eup %732 }
 0x20e   : > { %v420_v44 = vmul.f32 %v733_v43, %v416_v41 }
 0x210   : > { %v422_v46 = vsel %vm421_vm1, %v416_v41, %v420_v44 }
 0x211   : > { %v735_v47 = vpop.eup %734  ;;  %v425_v48 = vsel %vm423_vm2, %v424_v45, %v422_v46 }
 0x212   : > { %v433_v49 = vadd.f32 1e-12, %v425_v48  ;;  %v427_v50 = vmul.f32 %v735_v47, %v418_v42 }
 0x214   : > { %736 = vrcp.f32 %v433_v49  ;;  %v429_v52 = vsel %vm428_vm3, %v418_v42, %v427_v50 }
 0x215   : > { %v432_v53 = vsel %vm430_vm4, %v431_v51, %v429_v52 }
 0x216   : > { %v434_v54 = vadd.f32 1e-12, %v432_v53 }
 0x218   : > { %738 = vrcp.f32 %v434_v54 }
 0x21e   : > { %v737_v55 = vpop.eup %736 }
 0x21f   : > { %v439_v56 = vmul.f32 %v737_v55, %v405_v36 }
 0x221   : > { %441 = vst [vmem:[#allocation9] sm:$0xff] %v439_v56 }
 0x222   : > { %v739_v57 = vpop.eup %738 }
 0x223   : > { %v440_v58 = vmul.f32 %v739_v57, %v406_v38 }
 0x225   : > { %442 = vst [vmem:[#allocation9 + $0x8] sm:$0xff] %v440_v58 }
 0x226 PF: > { %p595_p5 = scmp.ne.s32.totalorder %s904_s18, 3 }
 0x227   : > { %447 = vst [vmem:[#allocation8] sm:$0xff] (!%p595_p5), %v405_v36  ;;  %448 = vst [vmem:[#allocation8 + $0x8] sm:$0xff] (!%p595_p5), %v406_v38 }
 0x228   : > { %446 = sbr.rel (%p595_p5) target bundleno = 559 (0x22f), region = 52 }
 0x22f PF: > { %p1116_p8 = scmp.eq.s32.totalorder %s574_s21, 3  ;;  %s922_s30 = smov [#allocation8]  }
 0x230   : > { %s458_s29 = sshll.u32 %s922_s30, 4  ;;  %s459_s29 = int_to_ptr.vmem [resolvable:$true] %s458_s29 }
 0x231   : > { %s798_s5 = scalar_lea.vmem %s459_s29, 256  ;;  %p805_p13 = scmp.lt.s32.totalorder %s459_s29, %s459_s29 }
 0x232   : > { %p799_p9 = scmp.ne.s32.totalorder %s459_s29, %s798_s5  ;;  %p806_p2 = scmp.lt.s32.totalorder %s798_s5, %s798_s5 }
 0x234   : > { %p800_p10 = pnand %p799_p9, %p1116_p8  ;;  %p807_p3 = por %p806_p2, %p805_p13 }
 0x236   : > { %p801_p11 = pneg %p800_p10 }
 0x238   : > { %p808_p12 = pnand %p807_p3, %p801_p11 }
 0x23a   : > { %811 = shalt.err (!%p808_p12)
}
 0x23b   : > { %s812_s21 = scalar_lea.hbm %s1185_s3, 256 }
 0x23c   : > { %p813_p0 = scmp.ne.s32.totalorder %s1185_s3, %s812_s21  ;;  %p818_p4 = scmp.lt.u32.totalorder %s812_s21, %s1185_s3 }
 0x23e   : > { %p814_p6 = pnand %p813_p0, %p1116_p8 }
 0x240   : > { %p815_p7 = pneg %p814_p6 }
 0x242   : > { %p820_p1 = pnand %p818_p4, %p815_p7 }
 0x244   : > { %823 = shalt.err (!%p820_p1)
}
 0x245   : > { %s923_s14 = smov 128   ;;  %s924_s15 = smov 8  }
 0x246   : > { %639 = dma.vmem_to_hbm [thread:$0]  (%p1116_p8), %s459_s29, 256, %s1185_s3, [#allocation5], %s923_s14, %s923_s14, %s924_s15  }
 0x247   : > { %s925_s22 = smov [#allocation9]  }
 0x248   : > { %s474_s26 = sshll.u32 %s925_s22, 4  ;;  %s475_s26 = int_to_ptr.vmem [resolvable:$true] %s474_s26 }
 0x249   : > { %s824_s9 = scalar_lea.vmem %s475_s26, 256  ;;  %p831_p11 = scmp.lt.s32.totalorder %s475_s26, %s475_s26 }
 0x24a   : > { %p825_p5 = scmp.ne.s32.totalorder %s475_s26, %s824_s9  ;;  %p832_p13 = scmp.lt.s32.totalorder %s824_s9, %s824_s9 }
 0x24c   : > { %p826_p9 = pnand %p825_p5, %p1116_p8  ;;  %p833_p2 = por %p832_p13, %p831_p11 }
 0x24e   : > { %p827_p10 = pneg %p826_p9 }
 0x250   : > { %p834_p3 = pnand %p833_p2, %p827_p10 }
 0x252   : > { %837 = shalt.err (!%p834_p3)
}
 0x253   : > { %s838_s30 = scalar_lea.hbm %s1186_s4, 256 }
 0x254   : > { %p839_p12 = scmp.ne.s32.totalorder %s1186_s4, %s838_s30  ;;  %p844_p7 = scmp.lt.u32.totalorder %s838_s30, %s1186_s4 }
 0x256   : > { %p840_p0 = pnand %p839_p12, %p1116_p8 }
 0x258   : > { %p841_p6 = pneg %p840_p0 }
 0x25a   : > { %p846_p4 = pnand %p844_p7, %p841_p6 }
 0x25c   : > { %849 = shalt.err (!%p846_p4)
}
 0x25d   : > { %641 = dma.vmem_to_hbm [thread:$0]  (%p1116_p8), %s475_s26, 256, %s1186_s4, [#allocation10], %s923_s14, %s923_s14, %s924_s15  }
 0x25e   : > { %883 = dma.done.wait (%p1116_p8), [#allocation5], 256  }
 0x25f   : > { %885 = vsyncadd (%p1116_p8), [#allocation5], 4294967040 }
 0x260   : > { %887 = dma.done.wait (%p1116_p8), [#allocation10], 256  }
 0x261   : > { %889 = vsyncadd (%p1116_p8), [#allocation10], 4294967040 }
 0x262 PF: > { %s21_s20 = sadd.s32 1, %s912_s20   ;;  %s1200_s15 = smov %s896_s16 }
 0x263   : > { %p18_p1 = scmp.ge.s32.totalorder %s21_s20, 6   ;;  %s1201_s16 = smov %s900_s17 }
 0x264   : > { %s1202_s17 = smov %s1036_s6  ;;  %s1203_s18 = smov %s908_s19 }
 0x265   : > { %s1204_s19 = smov %s1206_s28  ;;  %20 = sbr.rel (!%p18_p1) target bundleno = 7 (0x7), region = 100 }
 0x26c   :  { %494 = vsyncpa [#allocation4], 1 }
 0x26d   :  { %496 = vsyncpa [#allocation4 + $0x1], 1 }
 0x26e   :  { %497 = vsyncpa [#allocation7], 1 }
 0x26f   :  { %499 = vsyncpa [#allocation7 + $0x1], 1 }
 0x270   :  { %500 = vsyncpa [#allocation5], 1 }
 0x271   :  { %502 = vsyncpa [#allocation5 + $0x1], 1 }
 0x272   :  { %503 = vsyncpa [#allocation10], 1 }

</bundles_post_ra>
